<compile_context>
chip_gen: v5e
topology: v5e:2x2
jax: 0.10.0
libtpu: 0.0.40
codegen_flags: <defaults>
</compile_context>

<pallas_src>
import functools

import jax
import jax.numpy as jnp
from jax.experimental import pallas as pl
from jax.experimental.pallas import tpu as pltpu

_LANE = 128
_SUBLANE = 16  # bf16-safe second-to-last tile multiple


def _round_up(x: int, m: int) -> int:
    return ((x + m - 1) // m) * m


def _fused_mlp_kernel(*refs, n_layers: int, act, has_bias: bool):
    """Fully fused MLP forward for one batch tile.

    refs (inputs): xin, w0, [b0], w1, [b1], ..., w_{L-1}, [b_{L-1}]; last ref = output.
    xin is (tb, d0_pad) = concat(x, M) zero-padded; weights are (din_pad, dout_pad);
    biases are (1, dout_pad). All matmuls accumulate in f32 on the MXU; the
    activation chain stays in VMEM/registers (no HBM round-trips).
    """
    o_ref = refs[-1]
    pos = 0
    h = refs[pos][...]
    pos += 1
    for li in range(n_layers):
        w_ref = refs[pos]
        pos += 1
        h = jnp.dot(h.astype(w_ref.dtype), w_ref[...],
                    preferred_element_type=jnp.float32)
        if has_bias:
            b_ref = refs[pos]
            pos += 1
            h = h + b_ref[...].astype(jnp.float32)
        if li < n_layers - 1 and act is not None:
            h = jnp.maximum(h, 0.0) if act == "relu" else jax.nn.sigmoid(h)
    o_ref[...] = h.astype(o_ref.dtype)


class PredictorPallas:
    """JAX/Pallas port of the torch Predictor MLP (single fused kernel launch)."""

    def __init__(
        self,
        predictor_dims=(20, 512, 1024),
        predictor_non_linear_activation="relu",
        predictor_bias=True,
        dropout=0.0,
        param_dtype=jnp.bfloat16,   # MXU-native; set jnp.float32 for exact matmuls
        out_dtype=jnp.float32,
        key=None,
    ):
        if predictor_non_linear_activation not in (None, "relu", "sigmoid"):
            raise ValueError(
                f"unsupported activation: {predictor_non_linear_activation!r}")
        if dropout != 0.0:
            # TODO(synk): implement in-kernel dropout masking for training mode.
            raise NotImplementedError(
                "dropout > 0 (training mode) is not implemented; use dropout=0.0")

        self.dims = list(predictor_dims)
        self.n_layers = len(self.dims) - 1
        self.act = predictor_non_linear_activation
        self.bias = bool(predictor_bias)
        self.dropout = dropout
        self.param_dtype = param_dtype
        self.out_dtype = out_dtype

        # Lane-dense widths (every feature dim padded to a multiple of 128).
        self.dims_pad = [_round_up(d, _LANE) for d in self.dims]

        if key is None:
            key = jax.random.PRNGKey(0)

        dt = param_dtype
        # Unpadded f32 parameters (torch nn.Linear-style uniform init), stored as
        # (in_features, out_features) so the hot path is a plain x @ W matmul,
        # plus pre-padded param_dtype copies used by the fused kernel.
        self.weights, self.biases = [], []
        self.w_pad, self.b_pad = [], []
        for i in range(self.n_layers):
            din, dout = self.dims[i], self.dims[i + 1]
            din_p, dout_p = self.dims_pad[i], self.dims_pad[i + 1]
            key, wk, bk = jax.random.split(key, 3)
            bound = 1.0 / float(din) ** 0.5
            w = jax.random.uniform(wk, (din, dout), jnp.float32, -bound, bound)
            if self.bias:
                b = jax.random.uniform(bk, (1, dout), jnp.float32, -bound, bound)
            else:
                b = jnp.zeros((1, dout), jnp.float32)
            self.weights.append(w)
            self.biases.append(b)
            # Zero-padding is numerically exact: padded rows/cols contribute 0 and
            # any garbage in padded hidden lanes meets zero weight rows downstream.
            self.w_pad.append(
                jnp.zeros((din_p, dout_p), dt).at[:din, :dout].set(w.astype(dt)))
            self.b_pad.append(
                jnp.zeros((1, dout_p), dt).at[:, :dout].set(b.astype(dt)))

        # Single-buffer the constant (grid-invariant) weight/bias blocks; fall back
        # to default double buffering if this jax version rejects Buffered(1).
        self._single_buffer_weights = hasattr(pl, "Buffered")
        self._jit_forward = jax.jit(self._forward)

    # ---------------------------------------------------------------- forward
    def _forward(self, x, M_prediction):
        B, xf = x.shape
        has_m = M_prediction is not None
        mf = M_prediction.shape[1] if has_m else 0
        assert xf + mf == self.dims[0], (
            "x_feat (+ m_feat) must equal predictor_dims[0]")

        dt = self.param_dtype
        d0_pad = self.dims_pad[0]
        d_out, d_out_pad = self.dims[-1], self.dims_pad[-1]

        # Batch tile: up to 256 rows (fills the 256-wide MXU on v6e/v7x), rounded
        # to a multiple of 16 (bf16 sublane tile). Keep >= 2 grid steps when the
        # batch allows it so the "parallel" axis can shard across v7x's 2 TCs.
        tb = min(256, _round_up(B, _SUBLANE))
        B_pad = _round_up(B, tb)
        if B_pad // tb == 1 and tb > 128 and _round_up(B, 128) >= 2 * 128:
            tb = 128
            B_pad = _round_up(B, tb)

        # Merged, lane-padded input slab: concat([x, M]) folded into one buffer so
        # layer 0 is a single K=d0_pad matmul.
        xin = jnp.zeros((B_pad, d0_pad), dt)
        xin = xin.at[:B, :xf].set(x.astype(dt))
        if has_m:
            xin = xin.at[:B, xf:xf + mf].set(M_prediction.astype(dt))

        weight_mode = {}
        if self._single_buffer_weights:
            weight_mode = dict(pipeline_mode=pl.Buffered(1))

        inputs = [xin]
        in_specs = [pl.BlockSpec((tb, d0_pad), lambda i: (i, 0))]
        for li in range(self.n_layers):
            w = self.w_pad[li]
            inputs.append(w)
            in_specs.append(pl.BlockSpec(w.shape, lambda i: (0, 0), **weight_mode))
            if self.bias:
                b = self.b_pad[li]
                inputs.append(b)
                in_specs.append(pl.BlockSpec(b.shape, lambda i: (0, 0), **weight_mode))

        kernel = functools.partial(
            _fused_mlp_kernel, n_layers=self.n_layers, act=self.act,
            has_bias=self.bias)

        # Rough VMEM budget: resident weights (+biases) x buffer_count, pipelined
        # input/output tiles, and the f32 intermediate. Raise the scoped limit if
        # it exceeds the conservative default.
        itemsize = jnp.dtype(dt).itemsize
        w_bytes = sum(int(a.size) * itemsize for a in self.w_pad)
        if self.bias:
            w_bytes += sum(int(a.size) * itemsize for a in self.b_pad)
        buf_count = 1 if self._single_buffer_weights else 2
        tile_bytes = (2 * tb * d0_pad * itemsize
                      + 2 * tb * d_out_pad * jnp.dtype(self.out_dtype).itemsize)
        interm_bytes = 2 * tb * max(self.dims_pad[1:]) * 4
        est = buf_count * w_bytes + tile_bytes + interm_bytes
        compiler_kwargs = dict(dimension_semantics=("parallel",))
        if est > 12 * 1024 * 1024:
            # TODO(synk): tile the widest layer over an extra grid axis instead of
            #             relying on vmem_limit_bytes once weights outgrow VMEM.
            compiler_kwargs["vmem_limit_bytes"] = min(
                max(int(est * 1.25), 32 * 1024 * 1024), 64 * 1024 * 1024)

        out_pad = pl.pallas_call(
            kernel,
            out_shape=jax.ShapeDtypeStruct((B_pad, d_out_pad), self.out_dtype),
            grid_spec=pltpu.PrefetchScalarGridSpec(
                num_scalar_prefetch=0,
                grid=(B_pad // tb,),
                in_specs=in_specs,
                out_specs=pl.BlockSpec((tb, d_out_pad), lambda i: (i, 0)),
            ),
            compiler_params=pltpu.CompilerParams(**compiler_kwargs),
        )(*inputs)

        if B_pad == B and d_out_pad == d_out:
            return out_pad
        return out_pad[:B, :d_out]

    def __call__(self, x, M_prediction=None):
        try:
            return self._jit_forward(x, M_prediction)
        except Exception:
            if self._single_buffer_weights:
                # pl.Buffered(1) (single-buffered resident weights) unsupported here;
                # retry once with default double buffering (semantics unchanged).
                self._single_buffer_weights = False
                return self._jit_forward(x, M_prediction)
            raise

    # --------------------------------------------------------------- reference
    def reference(self, x, M_prediction=None):
        """Pure-JAX f32 reference matching the torch module (eval mode)."""
        hid = (jnp.concatenate([x, M_prediction], axis=1)
               if M_prediction is not None else x)
        for i, (w, b) in enumerate(zip(self.weights, self.biases)):
            hid = hid @ w + b
            if i < self.n_layers - 1 and self.act is not None:
                hid = jnp.maximum(hid, 0.0) if self.act == "relu" else jax.nn.sigmoid(hid)
        return hid


if __name__ == "__main__":
    key = jax.random.PRNGKey(0)
    k1, kx, km, k2, kx2, k3, kx3 = jax.random.split(key, 7)

    # --- test 1: bf16 params, relu, concat(x, M) ----------------------------
    batch, x_feat, m_feat = 16, 24, 8
    dims = [x_feat + m_feat, 64, 16]
    model = PredictorPallas(
        predictor_dims=dims,
        predictor_non_linear_activation="relu",
        predictor_bias=True,
        dropout=0.0,
        param_dtype=jnp.bfloat16,
        key=k1,
    )
    x = jax.random.normal(kx, (batch, x_feat), jnp.float32)
    m = jax.random.normal(km, (batch, m_feat), jnp.float32)
    out = jax.block_until_ready(model(x, m))
    ref = model.reference(x, m)
    assert out.shape == (batch, dims[-1]), out.shape
    assert jnp.allclose(out, ref, atol=3e-2, rtol=3e-2), float(jnp.max(jnp.abs(out - ref)))

    # --- test 2: f32 params, sigmoid, M=None, ragged batch ------------------
    batch2, x_feat2 = 10, 24
    dims2 = [x_feat2, 48, 8]
    model2 = PredictorPallas(
        predictor_dims=dims2,
        predictor_non_linear_activation="sigmoid",
        predictor_bias=True,
        dropout=0.0,
        param_dtype=jnp.float32,
        key=k2,
    )
    x2 = jax.random.normal(kx2, (batch2, x_feat2), jnp.float32)
    out2 = jax.block_until_ready(model2(x2, None))
    ref2 = model2.reference(x2, None)
    assert out2.shape == (batch2, dims2[-1]), out2.shape
    assert jnp.allclose(out2, ref2, atol=2e-4, rtol=2e-4), float(jnp.max(jnp.abs(out2 - ref2)))

    # --- test 3: f32, no bias, no activation, tiny ragged batch -------------
    batch3, x_feat3 = 7, 16
    dims3 = [x_feat3, 32, 8]
    model3 = PredictorPallas(
        predictor_dims=dims3,
        predictor_non_linear_activation=None,
        predictor_bias=False,
        dropout=0.0,
        param_dtype=jnp.float32,
        key=k3,
    )
    x3 = jax.random.normal(kx3, (batch3, x_feat3), jnp.float32)
    out3 = jax.block_until_ready(model3(x3, None))
    ref3 = model3.reference(x3, None)
    assert out3.shape == (batch3, dims3[-1]), out3.shape
    assert jnp.allclose(out3, ref3, atol=2e-4, rtol=2e-4), float(jnp.max(jnp.abs(out3 - ref3)))

    print("KERNEL_OK")
</pallas_src>

<mosaic_0001>
module attributes {stable_mosaic.version = 11 : i64} {
  func.func @_fused_mlp_kernel(%arg0: i32, %arg1: memref<16x128xbf16, #tpu.memory_space<vmem>>, %arg2: memref<128x128xbf16, #tpu.memory_space<vmem>>, %arg3: memref<1x128xbf16, #tpu.memory_space<vmem>>, %arg4: memref<128x128xbf16, #tpu.memory_space<vmem>>, %arg5: memref<1x128xbf16, #tpu.memory_space<vmem>>, %arg6: memref<16x128xf32, #tpu.memory_space<vmem>>) attributes {dimension_semantics = [#tpu.dimension_semantics<parallel>], iteration_bounds = array<i64: 1>, scalar_prefetch = 0 : i64, scratch_operands = 0 : i64, tpu.core_type = #tpu.core_type<tc>, window_params = [{transform_indices = @transform_0, window_bounds = array<i64: 16, 128>}, {pipeline_mode = #tpu.pipeline_mode<synchronous>, transform_indices = @transform_1, window_bounds = array<i64: 128, 128>}, {pipeline_mode = #tpu.pipeline_mode<synchronous>, transform_indices = @transform_2, window_bounds = array<i64: 1, 128>}, {pipeline_mode = #tpu.pipeline_mode<synchronous>, transform_indices = @transform_3, window_bounds = array<i64: 128, 128>}, {pipeline_mode = #tpu.pipeline_mode<synchronous>, transform_indices = @transform_4, window_bounds = array<i64: 1, 128>}, {transform_indices = @transform_5, window_bounds = array<i64: 16, 128>}]} {
    %c0 = arith.constant 0 : index
    %c0_0 = arith.constant 0 : index
    %0 = vector.load %arg1[%c0, %c0_0] : memref<16x128xbf16, #tpu.memory_space<vmem>>, vector<16x128xbf16>
    %c0_1 = arith.constant 0 : index
    %c0_2 = arith.constant 0 : index
    %1 = vector.load %arg2[%c0_1, %c0_2] : memref<128x128xbf16, #tpu.memory_space<vmem>>, vector<128x128xbf16>
    %cst = arith.constant dense<0.000000e+00> : vector<16x128xf32>
    %2 = tpu.matmul %0, %1, %cst {dimension_numbers = #tpu.dot_dimension_numbers<[1], [0], [0], [1], [0, 0, 1, 1], [], []>} : vector<16x128xbf16>, vector<128x128xbf16>, vector<16x128xf32> -> vector<16x128xf32>
    %c0_3 = arith.constant 0 : index
    %c0_4 = arith.constant 0 : index
    %3 = vector.load %arg3[%c0_3, %c0_4] : memref<1x128xbf16, #tpu.memory_space<vmem>>, vector<1x128xbf16>
    %4 = arith.extf %3 : vector<1x128xbf16> to vector<1x128xf32>
    %5 = vector.broadcast %4 : vector<1x128xf32> to vector<16x128xf32>
    %6 = arith.addf %2, %5 : vector<16x128xf32>
    %cst_5 = arith.constant 0.000000e+00 : f32
    %7 = vector.broadcast %cst_5 : f32 to vector<16x128xf32>
    %8 = arith.maximumf %6, %7 : vector<16x128xf32>
    %9 = arith.truncf %8 : vector<16x128xf32> to vector<16x128xbf16>
    %c0_6 = arith.constant 0 : index
    %c0_7 = arith.constant 0 : index
    %10 = vector.load %arg4[%c0_6, %c0_7] : memref<128x128xbf16, #tpu.memory_space<vmem>>, vector<128x128xbf16>
    %cst_8 = arith.constant dense<0.000000e+00> : vector<16x128xf32>
    %11 = tpu.matmul %9, %10, %cst_8 {dimension_numbers = #tpu.dot_dimension_numbers<[1], [0], [0], [1], [0, 0, 1, 1], [], []>} : vector<16x128xbf16>, vector<128x128xbf16>, vector<16x128xf32> -> vector<16x128xf32>
    %c0_9 = arith.constant 0 : index
    %c0_10 = arith.constant 0 : index
    %12 = vector.load %arg5[%c0_9, %c0_10] : memref<1x128xbf16, #tpu.memory_space<vmem>>, vector<1x128xbf16>
    %13 = arith.extf %12 : vector<1x128xbf16> to vector<1x128xf32>
    %14 = vector.broadcast %13 : vector<1x128xf32> to vector<16x128xf32>
    %15 = arith.addf %11, %14 : vector<16x128xf32>
    %c0_11 = arith.constant 0 : index
    %c0_12 = arith.constant 0 : index
    %16 = vector.load %arg6[%c0_11, %c0_12] : memref<16x128xf32, #tpu.memory_space<vmem>>, vector<16x128xf32>
    tpu.vector_store %arg6[%c0_11, %c0_12], %15 {strides = array<i32>} : memref<16x128xf32, #tpu.memory_space<vmem>>, vector<16x128xf32>,
    return
  }
  func.func @transform_0(%arg0: i32) -> (i32, i32) {
    %c0_i32 = arith.constant 0 : i32
    %c0_i32_0 = arith.constant 0 : i32
    return %arg0, %c0_i32 : i32, i32
  }
  func.func @transform_1(%arg0: i32) -> (i32, i32) {
    %c0_i32 = arith.constant 0 : i32
    %c0_i32_0 = arith.constant 0 : i32
    %c0_i32_1 = arith.constant 0 : i32
    return %c0_i32, %c0_i32_0 : i32, i32
  }
  func.func @transform_2(%arg0: i32) -> (i32, i32) {
    %c0_i32 = arith.constant 0 : i32
    %c0_i32_0 = arith.constant 0 : i32
    %c0_i32_1 = arith.constant 0 : i32
    return %c0_i32, %c0_i32_0 : i32, i32
  }
  func.func @transform_3(%arg0: i32) -> (i32, i32) {
    %c0_i32 = arith.constant 0 : i32
    %c0_i32_0 = arith.constant 0 : i32
    %c0_i32_1 = arith.constant 0 : i32
    return %c0_i32, %c0_i32_0 : i32, i32
  }
  func.func @transform_4(%arg0: i32) -> (i32, i32) {
    %c0_i32 = arith.constant 0 : i32
    %c0_i32_0 = arith.constant 0 : i32
    %c0_i32_1 = arith.constant 0 : i32
    return %c0_i32, %c0_i32_0 : i32, i32
  }
  func.func @transform_5(%arg0: i32) -> (i32, i32) {
    %c0_i32 = arith.constant 0 : i32
    %c0_i32_0 = arith.constant 0 : i32
    return %arg0, %c0_i32 : i32, i32
  }
}

</mosaic_0001>

<bundles_post_ra>
// kernel: _forward.1
= control target key start
LH: loop header
LB: loop body
LE: loop exit
PB: predicated region body
PF: predicated region fallthrough
CT: control target
= control target key end

     0   :  { %10 = vsyncpa [#allocation3], 0  ;;  %s473_s0 = inlined_call_operand.vmem [shape: bf16[16,128], index: 0, kind: input, shape index: {}]   ;;  %s474_s1 = inlined_call_operand.hbm [shape: bf16[128,128], index: 1, kind: input, shape index: {}]   ;;  %s475_s2 = inlined_call_operand.vmem [shape: bf16[1,128], index: 2, kind: input, shape index: {}]   ;;  %s476_s3 = inlined_call_operand.hbm [shape: bf16[128,128], index: 3, kind: input, shape index: {}]   ;;  %s477_s4 = inlined_call_operand.vmem [shape: bf16[1,128], index: 4, kind: input, shape index: {}]   ;;  %s478_s5 = inlined_call_operand.hbm [shape: f32[16,128], index: 5, kind: output, shape index: {}]  }
   0x1   :  { %11 = vsyncpa [#allocation6], 0 }
   0x2   :  { %12 = vsyncpa [#allocation4], 0  ;;  %s19_s20 = sshll.u32 %s474_s1, 4  ;;  %s418_s21 = smov [#allocation2]   ;;  %s20_s20 = int_to_ptr.hbm [resolvable:$true] %s19_s20 }
   0x3   :  { %s21_s22 = sshll.u32 %s418_s21, 4  ;;  %s34_s25 = sshll.u32 %s476_s3, 4  ;;  %s22_s22 = int_to_ptr.vmem [resolvable:$true] %s21_s22  ;;  %s35_s25 = int_to_ptr.hbm [resolvable:$true] %s34_s25 }
   0x4   :  { %s419_s26 = smov 64   ;;  %s420_s27 = smov 4  }
   0x5   :  { %27 = dma.hbm_to_vmem [thread:$0]  %s20_s20, 1024, %s22_s22, [#allocation3], %s419_s26, %s419_s26, %s420_s27  }
   0x6   :  { %s421_s28 = smov [#allocation5]  }
   0x7   :  { %s36_s29 = sshll.u32 %s421_s28, 4  ;;  %s37_s29 = int_to_ptr.vmem [resolvable:$true] %s36_s29 }
   0x8   :  { %42 = dma.hbm_to_vmem [thread:$0]  %s35_s25, 1024, %s37_s29, [#allocation6], %s419_s26, %s419_s26, %s420_s27  }
   0x9   :  { %412 = dma.done.wait [#allocation3], 1024  }
   0xa   :  { %413 = vsyncadd [#allocation3], 4294966272 }
   0xb   :  { %414 = dma.done.wait [#allocation6], 1024  }
   0xc   :  { %415 = vsyncadd [#allocation6], 4294966272  ;;  %v324_v0 = vld [vmem:[#allocation2 + $0x38] sm:$0xff]  ;;  %v323_v1 = vld [vmem:[#allocation2 + $0x30] sm:$0xff]  ;;  %s234_s11 = sshll.u32 %s478_s5, 4  ;;  %s423_s12 = smov 128   ;;  %s235_s11 = int_to_ptr.hbm [resolvable:$true] %s234_s11 }
   0xd   :  { %128 = vmatpush.bf16.msra.mxu0 %v324_v0  ;;  %v332_v2 = vld [vmem:[#allocation5 + $0x38] sm:$0xff]  ;;  %v331_v3 = vld [vmem:[#allocation5 + $0x30] sm:$0xff]  ;;  %v322_v4 = vld [vmem:[#allocation2 + $0x28] sm:$0xff]  ;;  %s424_s13 = smov 8  }
   0xe   :  { %212 = vmatpush.bf16.msra.mxu1 %v332_v2  ;;  %v330_v5 = vld [vmem:[#allocation5 + $0x28] sm:$0xff]  ;;  %v321_v6 = vld [vmem:[#allocation2 + $0x20] sm:$0xff]  ;;  %v320_v8 = vld [vmem:[#allocation2 + $0x18] sm:$0xff] }
   0xf   :  { %v329_v7 = vld [vmem:[#allocation5 + $0x20] sm:$0xff]  ;;  %v319_v9 = vld [vmem:[#allocation2 + $0x10] sm:$0xff]  ;;  %v318_v10 = vld [vmem:[#allocation2 + $0x8] sm:$0xff] }
  0x10   :  { %v317_v11 = vld [vmem:[#allocation2] sm:$0xff]  ;;  %v328_v13 = vld [vmem:[#allocation5 + $0x18] sm:$0xff]  ;;  %v327_v14 = vld [vmem:[#allocation5 + $0x10] sm:$0xff] }
  0x11   :  { %129 = vmatpush.bf16.msra.mxu0 %v323_v1  ;;  %v316_v12 = vld [vmem:[%s473_s0] sm:$0xff]  ;;  %v326_v15 = vld [vmem:[#allocation5 + $0x8] sm:$0xff] }
  0x12   :  { %213 = vmatpush.bf16.msra.mxu1 %v331_v3  ;;  %v325_v16 = vld [vmem:[#allocation5] sm:$0xff] }
  0x13   :  { %v71_v17 = vld [vmem:[%s475_s2] sm:$0x1]  ;;  %s422_s2 = smov [#allocation7]  }
  0x14   :  { %v72_v18 = vunpack.c.l.bf16 %v71_v17  ;;  %v161_v27 = vld [vmem:[%s477_s4] sm:$0x1]  ;;  %s232_s8 = sshll.u32 %s422_s2, 4  ;;  %s233_s8 = int_to_ptr.vmem [resolvable:$true] %s232_s8 }
  0x15   :  { %130 = vmatpush.bf16.msra.mxu0 %v322_v4  ;;  %v162_v28 = vunpack.c.l.bf16 %v161_v27 }
  0x16   :  { %214 = vmatpush.bf16.msra.mxu1 %v330_v5  ;;  %v73_v20 = vperm.slane %v72_v18, 0 }
  0x17   :  { %v163_v29 = vperm.slane %v162_v28, 0 }
  0x19   :  { %131 = vmatpush.bf16.msra.mxu0 %v321_v6 }
  0x1a   :  { %215 = vmatpush.bf16.msra.mxu1 %v329_v7 }
  0x1d   :  { %132 = vmatpush.bf16.msra.mxu0 %v320_v8 }
  0x1e   :  { %216 = vmatpush.bf16.msra.mxu1 %v328_v13 }
  0x21   :  { %133 = vmatpush.bf16.msra.mxu0 %v319_v9 }
  0x22   :  { %217 = vmatpush.bf16.msra.mxu1 %v327_v14 }
  0x25   :  { %134 = vmatpush.bf16.msra.mxu0 %v318_v10 }
  0x26   :  { %218 = vmatpush.bf16.msra.mxu1 %v326_v15 }
  0x29   :  { %135 = vmatpush.bf16.msra.mxu0 %v317_v11 }
  0x2a   :  { %219 = vmatpush.bf16.msra.mxu1 %v325_v16 }
  0x2c   :  { %136 = vmatmul.bf16.vlgmr.msra.gmra.mxu0 %v316_v12 }
  0xa9   :  { %v137_v19 = vpop.f32.mrf.mxu0 }
  0xaa   :  { %v138_v21 = vadd.f32 %v137_v19, %v73_v20 }
  0xac   :  { %v142_v24 = vmax.f32 %v138_v21, 0.0 }
  0xb1   :  { %v139_v22 = vpop.f32.mrf.mxu0 }
  0xb2   :  { %v140_v23 = vadd.f32 %v139_v22, %v73_v20 }
  0xb4   :  { %v143_v25 = vmax.f32 %v140_v23, 0.0 }
  0xb6   :  { %v144_v26 = vpack.c.bf16 %v143_v25, %v142_v24 }
  0xb8   :  { %220 = vmatmul.bf16.vlgmr.msra.gmra.mxu1 %v144_v26 }
 0x135   :  { %v221_v30 = vpop.f32.mrf.mxu1 }
 0x136   :  { %v222_v31 = vadd.f32 %v221_v30, %v163_v29 }
 0x138   :  { %226 = vst [vmem:[#allocation7] sm:$0xff] %v222_v31 }
 0x13d   :  { %v223_v32 = vpop.f32.mrf.mxu1 }
 0x13e   :  { %v224_v33 = vadd.f32 %v223_v32, %v163_v29 }
 0x140   :  { %227 = vst [vmem:[#allocation7 + $0x8] sm:$0xff] %v224_v33 }
 0x141   :  { %240 = dma.vmem_to_hbm [thread:$0]  %s233_s8, 256, %s235_s11, [#allocation4], %s423_s12, %s423_s12, %s424_s13  }
 0x142   :  { %416 = dma.done.wait [#allocation4], 256  }
 0x143   :  { %417 = vsyncadd [#allocation4], 4294967040 }
 0x144   :  { %245 = vsyncpa [#allocation3], 1 }
 0x145   :  { %246 = vsyncpa [#allocation6], 1 }
 0x146   :  { %247 = vsyncpa [#allocation4], 1 }

</bundles_post_ra>
